<compile_context>
chip_gen: v7x
topology: tpu7x:2x2x1
jax: 0.10.0
libtpu: 0.0.40
codegen_flags: <defaults>
</compile_context>

<pallas_src>
import functools

import jax
import jax.numpy as jnp
from jax import lax
from jax.experimental import pallas as pl
from jax.experimental.pallas import tpu as pltpu


def _pro_chunk_kernel(
    # ---- inputs ----
    steps_ref,       # (CHUNK, S+R)      per-step [stimuli | noise]
    init_ref,        # (1, 2*DS+R)       packed initial state
    l_ref,           # (CHUNK, CHUNK)    lower-tri lambda-power matrix
    lam_ref,         # (CHUNK, 1)        lambda^(j+1)
    w1_ref,          # (S, RO+R+H)       [W_S^T | W_C^T | fc1_w^T]
    w2_ref,          # (H+DS, 2*RO)      blockdiag(fc2_w^T, U_2d)
    w3_ref,          # (2*RO, 2*R)       blockdiag(W_F, W_R^T)
    wi_ref,          # (R, R)            W_I
    b_ref,           # (1, H+RO)         [fc1_b | fc2_b]
    # ---- outputs ----
    out_ref,         # (CHUNK, OUT_W)    per-step [C | disc | ro_pred | temporal | 0...]
    state_out_ref,   # (1, 2*DS+R)       packed final state (after global step T-1)
    # ---- scratch ----
    state_s,         # VMEM (1, 2*DS+R)  chunk-to-chunk state carry
    e_s,             # VMEM (CHUNK+n_delay-1, S) extended stimulus buffer
    loop_s,          # VMEM (CHUNK, 4*R) [excit | control | noise | C] rows
    *,
    n_stim, n_resp, n_ro, n_delay, hidden,
    chunk, last_chunk, last_local,
    dt, beta, psi, phi, rho, response_threshold,
):
    f32 = jnp.float32
    S, R, RO, H = n_stim, n_resp, n_ro, hidden
    DS = n_delay * S
    CH = chunk
    cid = pl.program_id(0)

    # Load the initial state into the carry on the first chunk only.
    @pl.when(cid == 0)
    def _():
        state_s[...] = init_ref[...]

    stim = steps_ref[:, 0:S]            # (CH, S)
    noise = steps_ref[:, S:S + R]       # (CH, R)

    # ---- delay chain for the whole chunk (vectorized torch.roll) ----------
    # e_s rows: [delay-chain carry rows in reverse | this chunk's stimuli].
    # After step j, delay row d == stimulus from d steps ago == e_s[nd-1+j-d].
    for i in range(n_delay - 1):
        lo = (n_delay - 2 - i) * S
        e_s[i:i + 1, :] = state_s[:, lo:lo + S]
    e_s[n_delay - 1:n_delay - 1 + CH, :] = stim
    d_mat = jnp.concatenate(
        [e_s[n_delay - 1 - d:n_delay - 1 - d + CH, :] for d in range(n_delay)],
        axis=1)                                                    # (CH, DS)

    # ---- eligibility trace: linear recurrence as one lower-tri matmul -----
    # elig_j = sum_{k<=j} lambda^{j-k} D_k + lambda^{j+1} * elig_carry
    elig = (jnp.dot(l_ref[...], d_mat, preferred_element_type=f32)
            + lam_ref[...] * state_s[:, DS:2 * DS])                # (CH, DS)

    # ---- batched (chunk-wide) MXU dots -------------------------------------
    fc1_b = b_ref[:, 0:H]
    fc2_b = b_ref[:, H:H + RO]

    res1 = jnp.dot(stim, w1_ref[...], preferred_element_type=f32)  # (CH, RO+R+H)
    ws_out = res1[:, 0:RO]                        # stim @ W_S^T
    wc_out = res1[:, RO:RO + R]                   # stim @ W_C^T
    h = jnp.maximum(res1[:, RO + R:RO + R + H] + fc1_b, 0.0)       # relu(fc1(stim))

    lhs2 = jnp.concatenate([h, elig], axis=1)                      # (CH, H+DS)
    res2 = jnp.dot(lhs2, w2_ref[...], preferred_element_type=f32)  # (CH, 2*RO)
    valence = res2[:, 0:RO] + fc2_b
    temporal = res2[:, RO:2 * RO]                 # sum(U * elig, dims=(1,2))
    ro_pred = ws_out * valence                    # compute_ro_prediction

    lhs3 = jnp.concatenate([ro_pred, jnp.maximum(ro_pred, 0.0)], axis=1)
    res3 = jnp.dot(lhs3, w3_ref[...], preferred_element_type=f32)  # (CH, 2*R)
    proactive = -res3[:, 0:R]
    reactive = jnp.maximum(res3[:, R:2 * R], 0.0)
    control = phi * (proactive + reactive)
    excitation = rho * wc_out

    # ---- batched output lanes written once per chunk -----------------------
    out_ref[...] = jnp.zeros(out_ref.shape, f32)
    out_ref[:, 2 * R:2 * R + RO] = ro_pred
    out_ref[:, 2 * R + RO:2 * R + 2 * RO] = temporal

    # ---- tiny serial C recurrence ------------------------------------------
    loop_s[:, 0:R] = excitation
    loop_s[:, R:2 * R] = control
    loop_s[:, 2 * R:3 * R] = noise

    w_i = wi_ref[...]
    bdt = beta * dt
    c0 = state_s[:, 2 * DS:2 * DS + R]            # (1, R)

    def body(j, c):
        row = loop_s[pl.ds(j, 1), :]              # (1, 4*R)
        e = row[:, 0:R]
        ct = row[:, R:2 * R]
        nz = row[:, 2 * R:3 * R]
        inh = psi * jnp.dot(c, w_i, preferred_element_type=f32)
        d_c = bdt * (e * (1.0 - c) - (c + 0.05) * (inh + ct) + nz)
        c_new = jax.nn.sigmoid(c + d_c)
        loop_s[pl.ds(j, 1), 3 * R:4 * R] = c_new
        return c_new

    c_final = lax.fori_loop(0, CH, body, c0)

    # Batched discrete response + bulk C writeback (no per-step masked vst).
    c_all = loop_s[:, 3 * R:4 * R]                # (CH, R)
    out_ref[:, 0:R] = c_all
    out_ref[:, R:2 * R] = (c_all > response_threshold).astype(f32)

    # ---- carry state to the next chunk (in-place slice updates) ------------
    state_s[:, 0:DS] = d_mat[CH - 1:CH, :]
    state_s[:, DS:2 * DS] = elig[CH - 1:CH, :]
    state_s[:, 2 * DS:2 * DS + R] = c_final

    # ---- final model state (after global step T-1), written once -----------
    @pl.when(cid == last_chunk)
    def _():
        state_out_ref[:, 0:DS] = d_mat[last_local:last_local + 1, :]
        state_out_ref[:, DS:2 * DS] = elig[last_local:last_local + 1, :]
        state_out_ref[:, 2 * DS:2 * DS + R] = loop_s[last_local:last_local + 1,
                                                     3 * R:4 * R]


def _build_weight_slabs(params, n_stim, n_resp, n_ro, n_delay, hidden):
    """Pack all weights into MXU-ready slabs (built once, host side)."""
    f32 = jnp.float32
    S, R, RO, H = n_stim, n_resp, n_ro, hidden
    DS = n_delay * S

    # slab 1: LHS = stimuli
    w1 = jnp.zeros((S, RO + R + H), f32)
    w1 = w1.at[:, :RO].set(params["W_S"].T.astype(f32))
    w1 = w1.at[:, RO:RO + R].set(params["W_C"].T.astype(f32))
    w1 = w1.at[:, RO + R:].set(params["fc1_w"].T.astype(f32))

    # slab 2: LHS = [h, elig_flat]
    u2d = params["U"].astype(f32).reshape(RO, DS).T          # (DS, RO)
    w2 = jnp.zeros((H + DS, 2 * RO), f32)
    w2 = w2.at[:H, :RO].set(params["fc2_w"].T.astype(f32))
    w2 = w2.at[H:H + DS, RO:].set(u2d)

    # slab 3: LHS = [ro_pred, relu(ro_pred)]
    w3 = jnp.zeros((2 * RO, 2 * R), f32)
    w3 = w3.at[:RO, :R].set(params["W_F"].astype(f32))
    w3 = w3.at[RO:2 * RO, R:2 * R].set(params["W_R"].T.astype(f32))

    w_i = params["W_I"].astype(f32)
    bias = jnp.concatenate([params["fc1_b"].astype(f32),
                            params["fc2_b"].astype(f32)]).reshape(1, H + RO)
    return w1, w2, w3, w_i, bias


def pro_control_forward_steps(params, state, stimuli_seq, noise_seq, hp,
                              max_chunk=256):
    """Run T consecutive PROControl.forward steps with a chunked Pallas kernel.

    Returns (response, ro_predictions, temporal_prediction, response_discrete),
    each with leading dim T, plus the new state dict after the last step."""
    f32 = jnp.float32
    n_ro, n_stim = params["W_S"].shape
    n_resp = params["W_C"].shape[0]
    n_delay = state["delay_chain"].shape[0]
    hidden = params["fc1_b"].shape[0]
    S, R, RO, H = n_stim, n_resp, n_ro, hidden
    DS = n_delay * S
    state_len = 2 * DS + R
    T = int(stimuli_seq.shape[0])
    OUT_W = 128                                   # lane-dense per-step output row
    assert 2 * R + 2 * RO <= OUT_W

    # Chunk size: multiple of 8 (sublane-dense), capped (keeps the lambda
    # matrix + resident chunk buffers small even on v7x's 64 MiB VMEM).
    max_chunk = max(8, (int(max_chunk) // 8) * 8)
    chunk = min(max_chunk, ((T + 7) // 8) * 8)
    t_pad = ((T + chunk - 1) // chunk) * chunk
    num_chunks = t_pad // chunk
    last_chunk = (T - 1) // chunk
    last_local = (T - 1) % chunk

    # Lower-triangular lambda-power matrix for the eligibility-trace scan.
    lam = float(hp["lambda_decay"])
    idx = jnp.arange(chunk)
    diff = idx[:, None] - idx[None, :]
    lam_mat = jnp.where(
        diff >= 0,
        jnp.power(jnp.float32(lam), jnp.maximum(diff, 0).astype(f32)),
        0.0).astype(f32)                                          # (chunk, chunk)
    lam_pows = jnp.power(jnp.float32(lam),
                         (idx + 1).astype(f32)).reshape(chunk, 1)  # (chunk, 1)

    w1, w2, w3, w_i, bias = _build_weight_slabs(params, S, R, RO, n_delay, H)

    stim = jnp.zeros((t_pad, S), f32).at[:T].set(
        stimuli_seq.reshape(T, S).astype(f32))
    noz = jnp.zeros((t_pad, R), f32).at[:T].set(
        noise_seq.reshape(T, R).astype(f32))
    steps = jnp.concatenate([stim, noz], axis=1)                   # (t_pad, S+R)

    init_state = jnp.concatenate(
        [state["delay_chain"].astype(f32).reshape(1, DS),
         state["eligibility_trace"].astype(f32).reshape(1, DS),
         state["C"].astype(f32).reshape(1, R)], axis=1)

    kernel = functools.partial(
        _pro_chunk_kernel,
        n_stim=S, n_resp=R, n_ro=RO, n_delay=n_delay, hidden=H,
        chunk=chunk, last_chunk=last_chunk, last_local=last_local,
        dt=float(hp["dt"]), beta=float(hp["beta"]),
        psi=float(hp["psi"]), phi=float(hp["phi"]), rho=float(hp["rho"]),
        response_threshold=float(hp["response_threshold"]),
    )

    def const_spec(shape):
        return pl.BlockSpec(shape, lambda c: (0,) * len(shape))

    per_step_out, final_state = pl.pallas_call(
        kernel,
        grid=(num_chunks,),
        in_specs=[
            pl.BlockSpec((chunk, S + R), lambda c: (c, 0)),   # per-chunk stream
            const_spec((1, state_len)),                       # init state
            const_spec((chunk, chunk)),                       # lambda matrix
            const_spec((chunk, 1)),                           # lambda powers
            const_spec(tuple(w1.shape)),                      # weight slab 1
            const_spec(tuple(w2.shape)),                      # weight slab 2
            const_spec(tuple(w3.shape)),                      # weight slab 3
            const_spec(tuple(w_i.shape)),                     # W_I
            const_spec(tuple(bias.shape)),                    # biases
        ],
        out_specs=(
            pl.BlockSpec((chunk, OUT_W), lambda c: (c, 0)),   # per-step outputs
            const_spec((1, state_len)),                       # final state
        ),
        out_shape=(
            jax.ShapeDtypeStruct((t_pad, OUT_W), f32),
            jax.ShapeDtypeStruct((1, state_len), f32),
        ),
        scratch_shapes=[
            pltpu.VMEM((1, state_len), f32),                  # state carry
            pltpu.VMEM((chunk + n_delay - 1, S), f32),        # extended stimuli
            pltpu.VMEM((chunk, 4 * R), f32),                  # serial-loop rows
        ],
        compiler_params=pltpu.CompilerParams(
            dimension_semantics=("arbitrary",)),
    )(steps, init_state, lam_mat, lam_pows, w1, w2, w3, w_i, bias)

    rows = per_step_out[:T]                      # (T, OUT_W)
    resp = rows[:, 0:R]
    disc = rows[:, R:2 * R]
    ro_pred = rows[:, 2 * R:2 * R + RO]
    temporal = rows[:, 2 * R + RO:2 * R + 2 * RO]
    fs = final_state[0]
    new_state = dict(
        delay_chain=fs[0:DS].reshape(n_delay, S),
        eligibility_trace=fs[DS:2 * DS].reshape(n_delay, S),
        C=fs[2 * DS:2 * DS + R],
    )
    return resp, ro_pred, temporal, disc, new_state


def pro_control_forward(params, state, stimuli, noise, hp):
    """Single PROControl.forward step (module semantics)."""
    resp, ro, temporal, disc, new_state = pro_control_forward_steps(
        params, state, stimuli.reshape(1, -1), noise.reshape(1, -1), hp)
    return resp[0], ro[0], temporal[0], disc[0], new_state


def init_params(key, n_stimuli, n_responses, n_outcomes, n_delay_units, hidden=32):
    n_ro = n_responses * n_outcomes
    ks = jax.random.split(key, 6)
    f32 = jnp.float32

    W_S = jnp.abs(0.1 + 0.05 * jax.random.normal(ks[0], (n_ro, n_stimuli), f32))
    W_C = jnp.ones((n_responses, n_stimuli), f32)
    W_F = -jnp.abs(0.1 * jax.random.normal(ks[1], (n_ro, n_responses), f32))
    norm = jnp.sum(jnp.abs(W_F)) / (n_responses * n_outcomes)
    W_F = jnp.where(norm > 1.0, W_F / norm, W_F)
    W_R = jnp.zeros((n_responses, n_ro), f32)
    W_I = -jnp.eye(n_responses, dtype=f32)
    U = jnp.zeros((n_ro, n_delay_units, n_stimuli), f32)

    b1 = 1.0 / jnp.sqrt(jnp.float32(n_stimuli))
    b2 = 1.0 / jnp.sqrt(jnp.float32(hidden))
    fc1_w = jax.random.uniform(ks[2], (hidden, n_stimuli), f32, -b1, b1)
    fc1_b = jax.random.uniform(ks[3], (hidden,), f32, -b1, b1)
    fc2_w = jax.random.uniform(ks[4], (n_ro, hidden), f32, -b2, b2)
    fc2_b = jax.random.uniform(ks[5], (n_ro,), f32, -b2, b2)

    return dict(W_S=W_S, W_C=W_C, W_F=W_F, W_R=W_R, W_I=W_I, U=U,
                fc1_w=fc1_w, fc1_b=fc1_b, fc2_w=fc2_w, fc2_b=fc2_b)


def reference_forward(params, state, stimuli, noise, hp):
    """Pure-JAX mirror of one PROControl.forward step (correctness check)."""
    delay = jnp.roll(state["delay_chain"], 1, axis=0).at[0].set(stimuli)
    elig = delay + hp["lambda_decay"] * state["eligibility_trace"]
    h = jax.nn.relu(stimuli @ params["fc1_w"].T + params["fc1_b"])
    valence = h @ params["fc2_w"].T + params["fc2_b"]
    ro_pred = (params["W_S"] @ stimuli) * valence
    temporal = jnp.sum(params["U"] * elig[None], axis=(1, 2))
    C = state["C"]
    excitation = hp["rho"] * (stimuli @ params["W_C"].T)
    proactive = -(ro_pred @ params["W_F"])
    omega_n = jax.nn.relu(ro_pred)
    reactive = jax.nn.relu(omega_n @ params["W_R"].T)
    control = hp["phi"] * (proactive + reactive)
    inhibition = hp["psi"] * (C @ params["W_I"])
    delta_C = hp["beta"] * hp["dt"] * (excitation * (1 - C)
                                       - (C + 0.05) * (inhibition + control)
                                       + noise)
    C_new = jax.nn.sigmoid(C + delta_C)
    disc = (C_new > hp["response_threshold"]).astype(jnp.float32)
    new_state = dict(delay_chain=delay, eligibility_trace=elig, C=C_new)
    return (C_new, ro_pred, temporal, disc), new_state


if __name__ == "__main__":
    n_stimuli, n_responses, n_outcomes, n_delay_units, hidden = 8, 4, 2, 4, 32

    hp = dict(dt=0.1, beta=0.1, lambda_decay=0.95, psi=0.1, phi=0.1, rho=0.1,
              response_threshold=0.5)

    key = jax.random.PRNGKey(0)
    k_param, k_state, k_seq = jax.random.split(key, 3)
    params = init_params(k_param, n_stimuli, n_responses, n_outcomes,
                         n_delay_units, hidden)

    # Non-trivial starting state so the roll / trace path is exercised.
    kd, ke, kc = jax.random.split(k_state, 3)
    state = dict(
        delay_chain=jax.random.uniform(kd, (n_delay_units, n_stimuli), jnp.float32),
        eligibility_trace=jax.random.uniform(ke, (n_delay_units, n_stimuli), jnp.float32),
        C=0.1 * jax.random.uniform(kc, (n_responses,), jnp.float32),
    )

    def run_reference(stim_seq, noise_seq):
        st = dict(state)
        outs = []
        for t in range(stim_seq.shape[0]):
            o, st = reference_forward(params, st, stim_seq[t], noise_seq[t], hp)
            outs.append(o)
        return outs, st

    def check(tag, T, max_chunk):
        ks, kn = jax.random.split(jax.random.fold_in(k_seq, 1000 * T + max_chunk))
        stim_seq = jax.random.uniform(ks, (T, n_stimuli), jnp.float32)
        # torch.normal(0, 0.1, C.shape) generated host-side for determinism.
        noise_seq = 0.1 * jax.random.normal(kn, (T, n_responses), jnp.float32)

        outs = pro_control_forward_steps(params, state, stim_seq, noise_seq, hp,
                                         max_chunk=max_chunk)
        outs = jax.block_until_ready(outs)
        resp_seq, ro_seq, temp_seq, disc_seq, new_state = outs

        ref_outs, ref_state = run_reference(stim_seq, noise_seq)
        for t in range(T):
            r_r, r_ro, r_tp, r_dc = ref_outs[t]
            for g, r in ((resp_seq[t], r_r), (ro_seq[t], r_ro),
                         (temp_seq[t], r_tp), (disc_seq[t], r_dc)):
                assert g.shape == r.shape, (tag, t, g.shape, r.shape)
                assert jnp.allclose(g, r, atol=1e-3, rtol=1e-3), (tag, t, g, r)
        for k in ("delay_chain", "eligibility_trace", "C"):
            assert jnp.allclose(new_state[k], ref_state[k],
                                atol=1e-3, rtol=1e-3), (tag, k)
        return stim_seq, noise_seq

    # Single chunk (T padded to one 8-row chunk).
    stim8, noise8 = check("single_chunk", T=8, max_chunk=256)
    # Multiple chunks with a padded final chunk (exercises the carried state).
    check("multi_chunk_padded", T=20, max_chunk=8)

    # ---- single-step API (module.forward parity) ---------------------------
    r1, ro1, tp1, dc1, st1 = jax.block_until_ready(
        pro_control_forward(params, state, stim8[0], noise8[0], hp))
    (e_r, e_ro, e_tp, e_dc), _ = reference_forward(
        params, state, stim8[0], noise8[0], hp)
    for g, r in ((r1, e_r), (ro1, e_ro), (tp1, e_tp), (dc1, e_dc)):
        assert jnp.allclose(g, r, atol=1e-3, rtol=1e-3), (g, r)

    print("KERNEL_OK")
</pallas_src>

<mosaic_0001>
module attributes {stable_mosaic.version = 11 : i64} {
  func.func @_pro_chunk_kernel(%arg0: i32, %arg1: memref<8x12xf32, #tpu.memory_space<vmem>>, %arg2: memref<1x68xf32, #tpu.memory_space<vmem>>, %arg3: memref<8x8xf32, #tpu.memory_space<vmem>>, %arg4: memref<8x1xf32, #tpu.memory_space<vmem>>, %arg5: memref<8x44xf32, #tpu.memory_space<vmem>>, %arg6: memref<64x16xf32, #tpu.memory_space<vmem>>, %arg7: memref<16x8xf32, #tpu.memory_space<vmem>>, %arg8: memref<4x4xf32, #tpu.memory_space<vmem>>, %arg9: memref<1x40xf32, #tpu.memory_space<vmem>>, %arg10: memref<8x128xf32, #tpu.memory_space<vmem>>, %arg11: memref<1x68xf32, #tpu.memory_space<vmem>>, %arg12: memref<1x68xf32, #tpu.memory_space<vmem>>, %arg13: memref<11x8xf32, #tpu.memory_space<vmem>>, %arg14: memref<8x16xf32, #tpu.memory_space<vmem>>) attributes {dimension_semantics = [#tpu.dimension_semantics<arbitrary>], iteration_bounds = array<i64: 1>, scalar_prefetch = 0 : i64, scratch_operands = 3 : i64, tpu.core_type = #tpu.core_type<tc>, window_params = [{transform_indices = @transform_0, window_bounds = array<i64: 8, 12>}, {pipeline_mode = #tpu.pipeline_mode<synchronous>, transform_indices = @transform_1, window_bounds = array<i64: 1, 68>}, {pipeline_mode = #tpu.pipeline_mode<synchronous>, transform_indices = @transform_2, window_bounds = array<i64: 8, 8>}, {pipeline_mode = #tpu.pipeline_mode<synchronous>, transform_indices = @transform_3, window_bounds = array<i64: 8, 1>}, {pipeline_mode = #tpu.pipeline_mode<synchronous>, transform_indices = @transform_4, window_bounds = array<i64: 8, 44>}, {pipeline_mode = #tpu.pipeline_mode<synchronous>, transform_indices = @transform_5, window_bounds = array<i64: 64, 16>}, {pipeline_mode = #tpu.pipeline_mode<synchronous>, transform_indices = @transform_6, window_bounds = array<i64: 16, 8>}, {pipeline_mode = #tpu.pipeline_mode<synchronous>, transform_indices = @transform_7, window_bounds = array<i64: 4, 4>}, {pipeline_mode = #tpu.pipeline_mode<synchronous>, transform_indices = @transform_8, window_bounds = array<i64: 1, 40>}, {transform_indices = @transform_9, window_bounds = array<i64: 8, 128>}, {pipeline_mode = #tpu.pipeline_mode<synchronous>, transform_indices = @transform_10, window_bounds = array<i64: 1, 68>}]} {
    %c0_i32 = arith.constant 0 : i32
    %0 = arith.cmpi eq, %arg0, %c0_i32 : i32
    %1 = arith.extui %0 : i1 to i32
    %c0_i32_0 = arith.constant 0 : i32
    %2 = arith.cmpi ne, %1, %c0_i32_0 : i32
    scf.if %2 {
      %c0_76 = arith.constant 0 : index
      %c0_77 = arith.constant 0 : index
      %86 = vector.load %arg2[%c0_76, %c0_77] : memref<1x68xf32, #tpu.memory_space<vmem>>, vector<1x68xf32>
      %c0_78 = arith.constant 0 : index
      %c0_79 = arith.constant 0 : index
      %87 = vector.load %arg12[%c0_78, %c0_79] : memref<1x68xf32, #tpu.memory_space<vmem>>, vector<1x68xf32>
      tpu.vector_store %arg12[%c0_78, %c0_79], %86 {strides = array<i32>} : memref<1x68xf32, #tpu.memory_space<vmem>>, vector<1x68xf32>,
    } else {
    }
    %c0 = arith.constant 0 : index
    %c0_1 = arith.constant 0 : index
    %3 = vector.load %arg1[%c0, %c0_1] : memref<8x12xf32, #tpu.memory_space<vmem>>, vector<8x8xf32>
    %c0_2 = arith.constant 0 : index
    %c8 = arith.constant 8 : index
    %4 = vector.load %arg1[%c0_2, %c8] : memref<8x12xf32, #tpu.memory_space<vmem>>, vector<8x4xf32>
    %c0_3 = arith.constant 0 : index
    %c16 = arith.constant 16 : index
    %5 = vector.load %arg12[%c0_3, %c16] : memref<1x68xf32, #tpu.memory_space<vmem>>, vector<1x8xf32>
    %c0_4 = arith.constant 0 : index
    %c0_5 = arith.constant 0 : index
    %6 = vector.load %arg13[%c0_4, %c0_5] : memref<11x8xf32, #tpu.memory_space<vmem>>, vector<1x8xf32>
    tpu.vector_store %arg13[%c0_4, %c0_5], %5 {strides = array<i32>} : memref<11x8xf32, #tpu.memory_space<vmem>>, vector<1x8xf32>,
    %c0_6 = arith.constant 0 : index
    %c8_7 = arith.constant 8 : index
    %7 = vector.load %arg12[%c0_6, %c8_7] : memref<1x68xf32, #tpu.memory_space<vmem>>, vector<1x8xf32>
    %c1 = arith.constant 1 : index
    %c0_8 = arith.constant 0 : index
    %8 = vector.load %arg13[%c1, %c0_8] : memref<11x8xf32, #tpu.memory_space<vmem>>, vector<1x8xf32>
    tpu.vector_store %arg13[%c1, %c0_8], %7 {strides = array<i32>} : memref<11x8xf32, #tpu.memory_space<vmem>>, vector<1x8xf32>,
    %c0_9 = arith.constant 0 : index
    %c0_10 = arith.constant 0 : index
    %9 = vector.load %arg12[%c0_9, %c0_10] : memref<1x68xf32, #tpu.memory_space<vmem>>, vector<1x8xf32>
    %c2 = arith.constant 2 : index
    %c0_11 = arith.constant 0 : index
    %10 = vector.load %arg13[%c2, %c0_11] : memref<11x8xf32, #tpu.memory_space<vmem>>, vector<1x8xf32>
    tpu.vector_store %arg13[%c2, %c0_11], %9 {strides = array<i32>} : memref<11x8xf32, #tpu.memory_space<vmem>>, vector<1x8xf32>,
    %c3 = arith.constant 3 : index
    %c0_12 = arith.constant 0 : index
    %11 = vector.load %arg13[%c3, %c0_12] : memref<11x8xf32, #tpu.memory_space<vmem>>, vector<8x8xf32>
    tpu.vector_store %arg13[%c3, %c0_12], %3 {strides = array<i32>} : memref<11x8xf32, #tpu.memory_space<vmem>>, vector<8x8xf32>,
    %c3_13 = arith.constant 3 : index
    %c0_14 = arith.constant 0 : index
    %12 = vector.load %arg13[%c3_13, %c0_14] : memref<11x8xf32, #tpu.memory_space<vmem>>, vector<8x8xf32>
    %c2_15 = arith.constant 2 : index
    %c0_16 = arith.constant 0 : index
    %13 = vector.load %arg13[%c2_15, %c0_16] : memref<11x8xf32, #tpu.memory_space<vmem>>, vector<8x8xf32>
    %c1_17 = arith.constant 1 : index
    %c0_18 = arith.constant 0 : index
    %14 = vector.load %arg13[%c1_17, %c0_18] : memref<11x8xf32, #tpu.memory_space<vmem>>, vector<8x8xf32>
    %c0_19 = arith.constant 0 : index
    %c0_20 = arith.constant 0 : index
    %15 = vector.load %arg13[%c0_19, %c0_20] : memref<11x8xf32, #tpu.memory_space<vmem>>, vector<8x8xf32>
    %16 = tpu.concatenate %12, %13, %14, %15 in 1 : vector<8x8xf32>, vector<8x8xf32>, vector<8x8xf32>, vector<8x8xf32> -> vector<8x32xf32>
    %c0_21 = arith.constant 0 : index
    %c0_22 = arith.constant 0 : index
    %17 = vector.load %arg3[%c0_21, %c0_22] : memref<8x8xf32, #tpu.memory_space<vmem>>, vector<8x8xf32>
    %cst = arith.constant dense<0.000000e+00> : vector<8x32xf32>
    %18 = tpu.matmul %17, %16, %cst {dimension_numbers = #tpu.dot_dimension_numbers<[1], [0], [0], [1], [0, 0, 1, 1], [], []>} : vector<8x8xf32>, vector<8x32xf32>, vector<8x32xf32> -> vector<8x32xf32>
    %c0_23 = arith.constant 0 : index
    %c0_24 = arith.constant 0 : index
    %19 = vector.load %arg4[%c0_23, %c0_24] : memref<8x1xf32, #tpu.memory_space<vmem>>, vector<8x1xf32>
    %c0_25 = arith.constant 0 : index
    %c32 = arith.constant 32 : index
    %20 = vector.load %arg12[%c0_25, %c32] : memref<1x68xf32, #tpu.memory_space<vmem>>, vector<1x32xf32>
    %21 = vector.broadcast %19 : vector<8x1xf32> to vector<8x32xf32>
    %22 = vector.broadcast %20 : vector<1x32xf32> to vector<8x32xf32>
    %23 = arith.mulf %21, %22 : vector<8x32xf32>
    %24 = arith.addf %18, %23 : vector<8x32xf32>
    %c0_26 = arith.constant 0 : index
    %c0_27 = arith.constant 0 : index
    %25 = vector.load %arg9[%c0_26, %c0_27] : memref<1x40xf32, #tpu.memory_space<vmem>>, vector<1x32xf32>
    %c0_28 = arith.constant 0 : index
    %c32_29 = arith.constant 32 : index
    %26 = vector.load %arg9[%c0_28, %c32_29] : memref<1x40xf32, #tpu.memory_space<vmem>>, vector<1x8xf32>
    %c0_30 = arith.constant 0 : index
    %c0_31 = arith.constant 0 : index
    %27 = vector.load %arg5[%c0_30, %c0_31] : memref<8x44xf32, #tpu.memory_space<vmem>>, vector<8x44xf32>
    %cst_32 = arith.constant dense<0.000000e+00> : vector<8x44xf32>
    %28 = tpu.matmul %3, %27, %cst_32 {dimension_numbers = #tpu.dot_dimension_numbers<[1], [0], [0], [1], [0, 0, 1, 1], [], []>} : vector<8x8xf32>, vector<8x44xf32>, vector<8x44xf32> -> vector<8x44xf32>
    %29 = vector.extract_strided_slice %28 {offsets = [0, 0], sizes = [8, 8], strides = [1, 1]} : vector<8x44xf32> to vector<8x8xf32>
    %30 = vector.extract_strided_slice %28 {offsets = [0, 8], sizes = [8, 4], strides = [1, 1]} : vector<8x44xf32> to vector<8x4xf32>
    %31 = vector.extract_strided_slice %28 {offsets = [0, 12], sizes = [8, 32], strides = [1, 1]} : vector<8x44xf32> to vector<8x32xf32>
    %32 = vector.broadcast %25 : vector<1x32xf32> to vector<8x32xf32>
    %33 = arith.addf %31, %32 : vector<8x32xf32>
    %cst_33 = arith.constant 0.000000e+00 : f32
    %34 = vector.broadcast %cst_33 : f32 to vector<8x32xf32>
    %35 = arith.maximumf %33, %34 : vector<8x32xf32>
    %36 = tpu.concatenate %35, %24 in 1 : vector<8x32xf32>, vector<8x32xf32> -> vector<8x64xf32>
    %c0_34 = arith.constant 0 : index
    %c0_35 = arith.constant 0 : index
    %37 = vector.load %arg6[%c0_34, %c0_35] : memref<64x16xf32, #tpu.memory_space<vmem>>, vector<64x16xf32>
    %cst_36 = arith.constant dense<0.000000e+00> : vector<8x16xf32>
    %38 = tpu.matmul %36, %37, %cst_36 {dimension_numbers = #tpu.dot_dimension_numbers<[1], [0], [0], [1], [0, 0, 1, 1], [], []>} : vector<8x64xf32>, vector<64x16xf32>, vector<8x16xf32> -> vector<8x16xf32>
    %39 = vector.extract_strided_slice %38 {offsets = [0, 0], sizes = [8, 8], strides = [1, 1]} : vector<8x16xf32> to vector<8x8xf32>
    %40 = vector.broadcast %26 : vector<1x8xf32> to vector<8x8xf32>
    %41 = arith.addf %39, %40 : vector<8x8xf32>
    %42 = vector.extract_strided_slice %38 {offsets = [0, 8], sizes = [8, 8], strides = [1, 1]} : vector<8x16xf32> to vector<8x8xf32>
    %43 = arith.mulf %29, %41 : vector<8x8xf32>
    %cst_37 = arith.constant 0.000000e+00 : f32
    %44 = vector.broadcast %cst_37 : f32 to vector<8x8xf32>
    %45 = arith.maximumf %43, %44 : vector<8x8xf32>
    %46 = tpu.concatenate %43, %45 in 1 : vector<8x8xf32>, vector<8x8xf32> -> vector<8x16xf32>
    %c0_38 = arith.constant 0 : index
    %c0_39 = arith.constant 0 : index
    %47 = vector.load %arg7[%c0_38, %c0_39] : memref<16x8xf32, #tpu.memory_space<vmem>>, vector<16x8xf32>
    %cst_40 = arith.constant dense<0.000000e+00> : vector<8x8xf32>
    %48 = tpu.matmul %46, %47, %cst_40 {dimension_numbers = #tpu.dot_dimension_numbers<[1], [0], [0], [1], [0, 0, 1, 1], [], []>} : vector<8x16xf32>, vector<16x8xf32>, vector<8x8xf32> -> vector<8x8xf32>
    %49 = vector.extract_strided_slice %48 {offsets = [0, 0], sizes = [8, 4], strides = [1, 1]} : vector<8x8xf32> to vector<8x4xf32>
    %cst_41 = arith.constant 0.000000e+00 : f32
    %50 = vector.broadcast %cst_41 : f32 to vector<8x4xf32>
    %51 = arith.subf %50, %49 : vector<8x4xf32>
    %52 = vector.extract_strided_slice %48 {offsets = [0, 4], sizes = [8, 4], strides = [1, 1]} : vector<8x8xf32> to vector<8x4xf32>
    %cst_42 = arith.constant 0.000000e+00 : f32
    %53 = vector.broadcast %cst_42 : f32 to vector<8x4xf32>
    %54 = arith.maximumf %52, %53 : vector<8x4xf32>
    %55 = arith.addf %51, %54 : vector<8x4xf32>
    %cst_43 = arith.constant 1.000000e-01 : f32
    %56 = vector.broadcast %cst_43 : f32 to vector<8x4xf32>
    %57 = arith.mulf %56, %55 : vector<8x4xf32>
    %cst_44 = arith.constant 1.000000e-01 : f32
    %58 = vector.broadcast %cst_44 : f32 to vector<8x4xf32>
    %59 = arith.mulf %58, %30 : vector<8x4xf32>
    %cst_45 = arith.constant 0.000000e+00 : f32
    %60 = vector.broadcast %cst_45 : f32 to vector<8x128xf32>
    %c0_46 = arith.constant 0 : index
    %c0_47 = arith.constant 0 : index
    %61 = vector.load %arg10[%c0_46, %c0_47] : memref<8x128xf32, #tpu.memory_space<vmem>>, vector<8x128xf32>
    tpu.vector_store %arg10[%c0_46, %c0_47], %60 {strides = array<i32>} : memref<8x128xf32, #tpu.memory_space<vmem>>, vector<8x128xf32>,
    %c0_48 = arith.constant 0 : index
    %c8_49 = arith.constant 8 : index
    %62 = vector.load %arg10[%c0_48, %c8_49] : memref<8x128xf32, #tpu.memory_space<vmem>>, vector<8x8xf32>
    tpu.vector_store %arg10[%c0_48, %c8_49], %43 {strides = array<i32>} : memref<8x128xf32, #tpu.memory_space<vmem>>, vector<8x8xf32>,
    %c0_50 = arith.constant 0 : index
    %c16_51 = arith.constant 16 : index
    %63 = vector.load %arg10[%c0_50, %c16_51] : memref<8x128xf32, #tpu.memory_space<vmem>>, vector<8x8xf32>
    tpu.vector_store %arg10[%c0_50, %c16_51], %42 {strides = array<i32>} : memref<8x128xf32, #tpu.memory_space<vmem>>, vector<8x8xf32>,
    %c0_52 = arith.constant 0 : index
    %c0_53 = arith.constant 0 : index
    %64 = vector.load %arg14[%c0_52, %c0_53] : memref<8x16xf32, #tpu.memory_space<vmem>>, vector<8x4xf32>
    tpu.vector_store %arg14[%c0_52, %c0_53], %59 {strides = array<i32>} : memref<8x16xf32, #tpu.memory_space<vmem>>, vector<8x4xf32>,
    %c0_54 = arith.constant 0 : index
    %c4 = arith.constant 4 : index
    %65 = vector.load %arg14[%c0_54, %c4] : memref<8x16xf32, #tpu.memory_space<vmem>>, vector<8x4xf32>
    tpu.vector_store %arg14[%c0_54, %c4], %57 {strides = array<i32>} : memref<8x16xf32, #tpu.memory_space<vmem>>, vector<8x4xf32>,
    %c0_55 = arith.constant 0 : index
    %c8_56 = arith.constant 8 : index
    %66 = vector.load %arg14[%c0_55, %c8_56] : memref<8x16xf32, #tpu.memory_space<vmem>>, vector<8x4xf32>
    tpu.vector_store %arg14[%c0_55, %c8_56], %4 {strides = array<i32>} : memref<8x16xf32, #tpu.memory_space<vmem>>, vector<8x4xf32>,
    %c0_57 = arith.constant 0 : index
    %c0_58 = arith.constant 0 : index
    %67 = vector.load %arg8[%c0_57, %c0_58] : memref<4x4xf32, #tpu.memory_space<vmem>>, vector<4x4xf32>
    %c0_59 = arith.constant 0 : index
    %c64 = arith.constant 64 : index
    %68 = vector.load %arg12[%c0_59, %c64] : memref<1x68xf32, #tpu.memory_space<vmem>>, vector<1x4xf32>
    %c0_i32_60 = arith.constant 0 : i32
    %c8_i32 = arith.constant 8 : i32
    %69 = arith.addi %c0_i32_60, %c8_i32 : i32
    %c1_i32 = arith.constant 1 : i32
    %70 = scf.for %arg15 = %c0_i32_60 to %69 step %c1_i32 iter_args(%arg16 = %68) -> (vector<1x4xf32>)  : i32 {
      %86 = arith.index_cast %arg15 : i32 to index
      %c0_76 = arith.constant 0 : index
      %87 = vector.load %arg14[%86, %c0_76] : memref<8x16xf32, #tpu.memory_space<vmem>>, vector<1x16xf32>
      %88 = vector.extract_strided_slice %87 {offsets = [0, 0], sizes = [1, 4], strides = [1, 1]} : vector<1x16xf32> to vector<1x4xf32>
      %89 = vector.extract_strided_slice %87 {offsets = [0, 4], sizes = [1, 4], strides = [1, 1]} : vector<1x16xf32> to vector<1x4xf32>
      %90 = vector.extract_strided_slice %87 {offsets = [0, 8], sizes = [1, 4], strides = [1, 1]} : vector<1x16xf32> to vector<1x4xf32>
      %cst_77 = arith.constant dense<0.000000e+00> : vector<1x4xf32>
      %91 = tpu.matmul %arg16, %67, %cst_77 {dimension_numbers = #tpu.dot_dimension_numbers<[1], [0], [0], [1], [0, 0, 1, 1], [], []>} : vector<1x4xf32>, vector<4x4xf32>, vector<1x4xf32> -> vector<1x4xf32>
      %cst_78 = arith.constant 1.000000e-01 : f32
      %92 = vector.broadcast %cst_78 : f32 to vector<1x4xf32>
      %93 = arith.mulf %92, %91 : vector<1x4xf32>
      %cst_79 = arith.constant 1.000000e+00 : f32
      %94 = vector.broadcast %cst_79 : f32 to vector<1x4xf32>
      %95 = arith.subf %94, %arg16 : vector<1x4xf32>
      %96 = arith.mulf %88, %95 : vector<1x4xf32>
      %cst_80 = arith.constant 5.000000e-02 : f32
      %97 = vector.broadcast %cst_80 : f32 to vector<1x4xf32>
      %98 = arith.addf %arg16, %97 : vector<1x4xf32>
      %99 = arith.addf %93, %89 : vector<1x4xf32>
      %100 = arith.mulf %98, %99 : vector<1x4xf32>
      %101 = arith.subf %96, %100 : vector<1x4xf32>
      %102 = arith.addf %101, %90 : vector<1x4xf32>
      %cst_81 = arith.constant 0.00999999977 : f32
      %103 = vector.broadcast %cst_81 : f32 to vector<1x4xf32>
      %104 = arith.mulf %103, %102 : vector<1x4xf32>
      %105 = arith.addf %arg16, %104 : vector<1x4xf32>
      %106 = arith.negf %105 : vector<1x4xf32>
      %107 = math.exp %106 : vector<1x4xf32>
      %cst_82 = arith.constant 1.000000e+00 : f32
      %108 = vector.broadcast %cst_82 : f32 to vector<1x4xf32>
      %109 = arith.addf %108, %107 : vector<1x4xf32>
      %110 = arith.divf %108, %109 : vector<1x4xf32>
      %111 = arith.index_cast %arg15 : i32 to index
      %c12_83 = arith.constant 12 : index
      %112 = vector.load %arg14[%111, %c12_83] : memref<8x16xf32, #tpu.memory_space<vmem>>, vector<1x4xf32>
      tpu.vector_store %arg14[%111, %c12_83], %110 {strides = array<i32>} : memref<8x16xf32, #tpu.memory_space<vmem>>, vector<1x4xf32>,
      scf.yield %110 : vector<1x4xf32>
    }
    %c8_i32_61 = arith.constant 8 : i32
    %c0_62 = arith.constant 0 : index
    %c12 = arith.constant 12 : index
    %71 = vector.load %arg14[%c0_62, %c12] : memref<8x16xf32, #tpu.memory_space<vmem>>, vector<8x4xf32>
    %c0_63 = arith.constant 0 : index
    %c0_64 = arith.constant 0 : index
    %72 = vector.load %arg10[%c0_63, %c0_64] : memref<8x128xf32, #tpu.memory_space<vmem>>, vector<8x4xf32>
    tpu.vector_store %arg10[%c0_63, %c0_64], %71 {strides = array<i32>} : memref<8x128xf32, #tpu.memory_space<vmem>>, vector<8x4xf32>,
    %cst_65 = arith.constant 5.000000e-01 : f32
    %73 = vector.broadcast %cst_65 : f32 to vector<8x4xf32>
    %74 = arith.cmpf ogt, %71, %73 : vector<8x4xf32>
    %75 = arith.extui %74 : vector<8x4xi1> to vector<8x4xi32>
    %76 = arith.sitofp %75 : vector<8x4xi32> to vector<8x4xf32>
    %c0_66 = arith.constant 0 : index
    %c4_67 = arith.constant 4 : index
    %77 = vector.load %arg10[%c0_66, %c4_67] : memref<8x128xf32, #tpu.memory_space<vmem>>, vector<8x4xf32>
    tpu.vector_store %arg10[%c0_66, %c4_67], %76 {strides = array<i32>} : memref<8x128xf32, #tpu.memory_space<vmem>>, vector<8x4xf32>,
    %78 = vector.extract_strided_slice %16 {offsets = [7, 0], sizes = [1, 32], strides = [1, 1]} : vector<8x32xf32> to vector<1x32xf32>
    %c0_68 = arith.constant 0 : index
    %c0_69 = arith.constant 0 : index
    %79 = vector.load %arg12[%c0_68, %c0_69] : memref<1x68xf32, #tpu.memory_space<vmem>>, vector<1x32xf32>
    tpu.vector_store %arg12[%c0_68, %c0_69], %78 {strides = array<i32>} : memref<1x68xf32, #tpu.memory_space<vmem>>, vector<1x32xf32>,
    %80 = vector.extract_strided_slice %24 {offsets = [7, 0], sizes = [1, 32], strides = [1, 1]} : vector<8x32xf32> to vector<1x32xf32>
    %c0_70 = arith.constant 0 : index
    %c32_71 = arith.constant 32 : index
    %81 = vector.load %arg12[%c0_70, %c32_71] : memref<1x68xf32, #tpu.memory_space<vmem>>, vector<1x32xf32>
    tpu.vector_store %arg12[%c0_70, %c32_71], %80 {strides = array<i32>} : memref<1x68xf32, #tpu.memory_space<vmem>>, vector<1x32xf32>,
    %c0_72 = arith.constant 0 : index
    %c64_73 = arith.constant 64 : index
    %82 = vector.load %arg12[%c0_72, %c64_73] : memref<1x68xf32, #tpu.memory_space<vmem>>, vector<1x4xf32>
    tpu.vector_store %arg12[%c0_72, %c64_73], %70 {strides = array<i32>} : memref<1x68xf32, #tpu.memory_space<vmem>>, vector<1x4xf32>,
    %c0_i32_74 = arith.constant 0 : i32
    %83 = arith.cmpi eq, %arg0, %c0_i32_74 : i32
    %84 = arith.extui %83 : i1 to i32
    %c0_i32_75 = arith.constant 0 : i32
    %85 = arith.cmpi ne, %84, %c0_i32_75 : i32
    scf.if %85 {
      %86 = vector.extract_strided_slice %16 {offsets = [7, 0], sizes = [1, 32], strides = [1, 1]} : vector<8x32xf32> to vector<1x32xf32>
      %c0_76 = arith.constant 0 : index
      %c0_77 = arith.constant 0 : index
      %87 = vector.load %arg11[%c0_76, %c0_77] : memref<1x68xf32, #tpu.memory_space<vmem>>, vector<1x32xf32>
      tpu.vector_store %arg11[%c0_76, %c0_77], %86 {strides = array<i32>} : memref<1x68xf32, #tpu.memory_space<vmem>>, vector<1x32xf32>,
      %88 = vector.extract_strided_slice %24 {offsets = [7, 0], sizes = [1, 32], strides = [1, 1]} : vector<8x32xf32> to vector<1x32xf32>
      %c0_78 = arith.constant 0 : index
      %c32_79 = arith.constant 32 : index
      %89 = vector.load %arg11[%c0_78, %c32_79] : memref<1x68xf32, #tpu.memory_space<vmem>>, vector<1x32xf32>
      tpu.vector_store %arg11[%c0_78, %c32_79], %88 {strides = array<i32>} : memref<1x68xf32, #tpu.memory_space<vmem>>, vector<1x32xf32>,
      %c7 = arith.constant 7 : index
      %c12_80 = arith.constant 12 : index
      %90 = vector.load %arg14[%c7, %c12_80] : memref<8x16xf32, #tpu.memory_space<vmem>>, vector<1x4xf32>
      %c0_81 = arith.constant 0 : index
      %c64_82 = arith.constant 64 : index
      %91 = vector.load %arg11[%c0_81, %c64_82] : memref<1x68xf32, #tpu.memory_space<vmem>>, vector<1x4xf32>
      tpu.vector_store %arg11[%c0_81, %c64_82], %90 {strides = array<i32>} : memref<1x68xf32, #tpu.memory_space<vmem>>, vector<1x4xf32>,
    } else {
    }
    return
  }
  func.func @transform_0(%arg0: i32) -> (i32, i32) {
    %c0_i32 = arith.constant 0 : i32
    %c0_i32_0 = arith.constant 0 : i32
    return %arg0, %c0_i32 : i32, i32
  }
  func.func @transform_1(%arg0: i32) -> (i32, i32) {
    %c0_i32 = arith.constant 0 : i32
    %c0_i32_0 = arith.constant 0 : i32
    %c0_i32_1 = arith.constant 0 : i32
    return %c0_i32, %c0_i32_0 : i32, i32
  }
  func.func @transform_2(%arg0: i32) -> (i32, i32) {
    %c0_i32 = arith.constant 0 : i32
    %c0_i32_0 = arith.constant 0 : i32
    %c0_i32_1 = arith.constant 0 : i32
    return %c0_i32, %c0_i32_0 : i32, i32
  }
  func.func @transform_3(%arg0: i32) -> (i32, i32) {
    %c0_i32 = arith.constant 0 : i32
    %c0_i32_0 = arith.constant 0 : i32
    %c0_i32_1 = arith.constant 0 : i32
    return %c0_i32, %c0_i32_0 : i32, i32
  }
  func.func @transform_4(%arg0: i32) -> (i32, i32) {
    %c0_i32 = arith.constant 0 : i32
    %c0_i32_0 = arith.constant 0 : i32
    %c0_i32_1 = arith.constant 0 : i32
    return %c0_i32, %c0_i32_0 : i32, i32
  }
  func.func @transform_5(%arg0: i32) -> (i32, i32) {
    %c0_i32 = arith.constant 0 : i32
    %c0_i32_0 = arith.constant 0 : i32
    %c0_i32_1 = arith.constant 0 : i32
    return %c0_i32, %c0_i32_0 : i32, i32
  }
  func.func @transform_6(%arg0: i32) -> (i32, i32) {
    %c0_i32 = arith.constant 0 : i32
    %c0_i32_0 = arith.constant 0 : i32
    %c0_i32_1 = arith.constant 0 : i32
    return %c0_i32, %c0_i32_0 : i32, i32
  }
  func.func @transform_7(%arg0: i32) -> (i32, i32) {
    %c0_i32 = arith.constant 0 : i32
    %c0_i32_0 = arith.constant 0 : i32
    %c0_i32_1 = arith.constant 0 : i32
    return %c0_i32, %c0_i32_0 : i32, i32
  }
  func.func @transform_8(%arg0: i32) -> (i32, i32) {
    %c0_i32 = arith.constant 0 : i32
    %c0_i32_0 = arith.constant 0 : i32
    %c0_i32_1 = arith.constant 0 : i32
    return %c0_i32, %c0_i32_0 : i32, i32
  }
  func.func @transform_9(%arg0: i32) -> (i32, i32) {
    %c0_i32 = arith.constant 0 : i32
    %c0_i32_0 = arith.constant 0 : i32
    return %arg0, %c0_i32 : i32, i32
  }
  func.func @transform_10(%arg0: i32) -> (i32, i32) {
    %c0_i32 = arith.constant 0 : i32
    %c0_i32_0 = arith.constant 0 : i32
    %c0_i32_1 = arith.constant 0 : i32
    return %c0_i32, %c0_i32_0 : i32, i32
  }
}

</mosaic_0001>

<bundles_post_ra>
// kernel: tpu_custom_call.1
= control target key start
LH: loop header
LB: loop body
LE: loop exit
PB: predicated region body
PF: predicated region fallthrough
CT: control target
= control target key end

     0   :  { %16 = vsyncpa [#allocation6], 0  ;;  %vm41_vm0 = vcmask 548864   ;;  %vm67_vm1 = vcmask 64512   ;;  %s1162_s0 = inlined_call_operand.vmem [shape: f32[8,12], index: 0, kind: input, shape index: {}]   ;;  %s1163_s1 = inlined_call_operand.vmem [shape: f32[1,68], index: 1, kind: input, shape index: {}]   ;;  %s1164_s2 = inlined_call_operand.vmem [shape: f32[8,8], index: 2, kind: input, shape index: {}]   ;;  %s1165_s3 = inlined_call_operand.vmem [shape: f32[8,1], index: 3, kind: input, shape index: {}]   ;;  %s1166_s4 = inlined_call_operand.vmem [shape: f32[8,44], index: 4, kind: input, shape index: {}]   ;;  %s1167_s5 = inlined_call_operand.vmem [shape: f32[64,16], index: 5, kind: input, shape index: {}]   ;;  %s1168_s6 = inlined_call_operand.vmem [shape: f32[16,8], index: 6, kind: input, shape index: {}]   ;;  %s1169_s7 = inlined_call_operand.vmem [shape: f32[4,4], index: 7, kind: input, shape index: {}]   ;;  %s1170_s8 = inlined_call_operand.vmem [shape: f32[1,40], index: 8, kind: input, shape index: {}]   ;;  %s1171_s9 = inlined_call_operand.hbm [shape: f32[8,128], index: 9, kind: output, shape index: {0}]   ;;  %s1172_s10 = inlined_call_operand.hbm [shape: f32[1,68], index: 10, kind: output, shape index: {1}]  }
   0x1   :  { %v40_v0 = vld [vmem:[%s1163_s1] sm:$0x1] }
   0x2   :  { %42 = vst.msk [vmem:[#allocation2] sm:$0x1] %vm41_vm0, %v40_v0  ;;  %v1011_v1 = vld [vmem:[%s1162_s0] sm:$0xff] }
   0x3   :  { %17 = vsyncpa [#allocation8], 0  ;;  %68 = vst.msk [vmem:[#allocation3 + $0x3] sm:$0xff] %vm67_vm1, %v1011_v1  ;;  %vm53_vm2 = vcmask 57344   ;;  %s925_s17 = smov 120   ;;  %v926_v5 = vmov 0  }
   0x4   :  { %855 = vset.pattern.permute.xlu1 %v926_v5  ;;  %856 = vset.pattern.permute.xlu0 %v926_v5  ;;  %s927_s0 = smov 112   ;;  %s928_s1 = smov 8   ;;  %v929_v8 = vmov 0.0   ;;  %vm930_vm3 = vmmov 0   ;;  %v91_v11 = vld [vmem:[%s1165_s3] sm:$0xff]  ;;  %vm86_vm4 = vcmask 130048  }
   0x5   :  { %758 = vmatprep.subr.mxu1 %v929_v8  ;;  %454 = vst [vmem:[#allocation5] sm:$0xff] %v929_v8  ;;  %760 = vmatprep.mubr.msk.f32.mxu1 %vm930_vm3, %v929_v8  ;;  %s931_s18 = smov 16   ;;  %s932_s21 = smov 24   ;;  %v733_v13 = vld [vmem:[%s1170_s8] ss:$0 sm:$0xff]  ;;  %vm88_vm5 = vcmask 195584  }
   0x6   :  { %784 = vmatprep.mubr.msk.f32.mxu0 %vm930_vm3, %v929_v8  ;;  %s933_s24 = smov 12   ;;  %v90_v20 = vld [vmem:[%s1164_s2] sm:$0xff]  ;;  %s934_s2 = smov 96   ;;  %v278_v26 = vld [vmem:[%s1167_s5 + $0x8] sm:$0xff]  ;;  %v279_v27 = vld [vmem:[%s1167_s5 + $0x10] sm:$0xff]  ;;  %v935_v28 = vmov 0.0|0.0  }
   0x7   :  { %v183_v22 = vld [vmem:[%s1166_s4] sm:$0xff]  ;;  %799 = vmatprep.subr.bf16.mxu0 %v935_v28  ;;  %v280_v30 = vld [vmem:[%s1167_s5 + $0x18] sm:$0xff]  ;;  %v282_v33 = vld [vmem:[%s1167_s5 + $0x28] sm:$0xff]  ;;  %s936_s22 = smov 32   ;;  %s937_s23 = smov 116   ;;  %vm275_vm6 = vcmask 261120  }
   0x8   :  { %v277_v25 = vld [vmem:[%s1167_s5] sm:$0xff]  ;;  %v803_v31 = vpack.c.bf16 %v280_v30, %v279_v27  ;;  %v283_v35 = vld [vmem:[%s1167_s5 + $0x30] sm:$0xff]  ;;  %v284_v36 = vld [vmem:[%s1167_s5 + $0x38] sm:$0xff]  ;;  %vm285_vm7 = vcmask 523264   ;;  %vm471_vm8 = vcmask 31744   ;;  %vm459_vm9 = vcmask 130112  }
   0x9   :  { %v729_v2 = vld [vmem:[#allocation2] ss:$0 sm:$0xff]  ;;  %v800_v29 = vpack.c.bf16 %v278_v26, %v277_v25  ;;  %v809_v37 = vpack.c.bf16 %v284_v36, %v283_v35  ;;  %v371_v51 = vld [vmem:[%s1168_s6 + $0x8] sm:$0xff]  ;;  %vm465_vm10 = vcmask 195712   ;;  %vm477_vm11 = vcmask 64544  }
   0xa   :  { %v1015_v3 = vld [vmem:[#allocation2] sm:$0x1]   ;;  %61 = vrot.lane.b32.xlu0 %v729_v2, %s925_s17  ;;  %v69_v15 = vld [vmem:[#allocation3 + $0x3] sm:$0xff]  ;;  %vm479_vm12 = vcmask 97344  }
   0xb   :  { %v65_v4 = vld [vmem:[#allocation2] sm:$0x1]  ;;  %801 = vmatpush3.bf16.msra.mxu0 %v800_v29 }
   0xc   :  { %66 = vst.msk [vmem:[#allocation3 + $0x2] sm:$0x1] %vm53_vm2, %v65_v4  ;;  %802 = vmatprep.subr.bf16.mxu0 %v935_v28  ;;  %v281_v32 = vld [vmem:[%s1167_s5 + $0x20] sm:$0xff] }
   0xd   :  { %v806_v34 = vpack.c.bf16 %v282_v33, %v281_v32  ;;  %v370_v50 = vld [vmem:[%s1168_s6] sm:$0xff]  ;;  %s938_s6 = smov 124  }
   0xe   :  { %50 = vrot.lane.b32.xlu0 %v729_v2, %s927_s0  ;;  %v812_v52 = vpack.c.bf16 %v371_v51, %v370_v50  ;;  %v1099_v4 = vld [vmem:[%s1169_s7] sm:$0xf]  ;;  %s1106_s7 = smov 0  }
   0xf   :  { %804 = vmatpush3.bf16.msra.mxu0 %v803_v31 }
  0x10   :  { %805 = vmatprep.subr.bf16.mxu0 %v935_v28 }
  0x13   :  { %v70_v6 = vld [vmem:[#allocation3 + $0x2] sm:$0xff]  ;;  %807 = vmatpush3.bf16.msra.mxu0 %v806_v34 }
  0x14   :  { %74 = vrot.lane.b32.xlu1 %v70_v6, %s928_s1  ;;  %808 = vmatprep.subr.bf16.mxu0 %v935_v28 }
  0x17   :  { %810 = vmatpush3.bf16.msra.mxu0 %v809_v37 }
  0x7c   :  { %v62_v7 = vpop.permute.xlu0 %61 }
  0x7d   :  { %64 = vst.msk [vmem:[#allocation3 + $0x1] sm:$0x1] %vm53_vm2, %v62_v7 }
  0x80   :  { %v51_v9 = vpop.permute.xlu0 %50 }
  0x81   :  { %54 = vst.msk [vmem:[#allocation3] sm:$0x1] %vm53_vm2, %v51_v9 }
  0x84   :  { %v71_v10 = vld [vmem:[#allocation3 + $0x1] sm:$0xff] }
  0x85   :  { %78 = vrot.lane.b32.xlu1 %v71_v10, %s931_s18 }
  0x86   :  { %v75_v14 = vpop.permute.xlu1 %74 }
  0x87   :  { %v85_v16 = vsel %vm67_vm1, %v69_v15, %v75_v14 }
  0x88   :  { %v72_v12 = vld [vmem:[#allocation3] sm:$0xff] }
  0x89   :  { %82 = vrot.lane.b32.xlu0 %v72_v12, %s932_s21  ;;  %95 = vperm.xlu1 %855, %v91_v11  }
  0x8d   :  { %262 = vrot.lane.b32.xlu0 %v733_v13, %s933_s24 }
  0xf7   :  { %v79_v17 = vpop.permute.xlu1 %78 }
  0xf8   :  { %v87_v18 = vsel %vm86_vm4, %v85_v16, %v79_v17 }
  0xfb   :  { %v83_v19 = vpop.permute.xlu0 %82 }
  0xfc   :  { %v1039_v21 = vsel %vm88_vm5, %v87_v18, %v83_v19 }
  0xfd   :  { %759 = vmatpush3.msra.mxu1 %v1039_v21 }
  0xfe   :  { %761 = vmatmul.mubr.msk.f32.vlgmr.msra.gmra.mrb[0].mxu1 %vm67_vm1, %v90_v20  ;;  %763 = vmatprep.subr.mxu1 %v929_v8 }
  0xff   :  { %764 = vmatpush3.msra.mxu1 %v183_v22  ;;  %765 = vmatprep.mubr.msk.f32.mxu1 %vm930_vm3, %v929_v8  ;;  %v263_v42 = vpop.permute.xlu0 %262 }
 0x100   :  { %811 = vmatprep.subr.bf16.mxu1 %v935_v28 }
 0x102   :  { %766 = vmatmul.mubr.msk.f32.vlgmr.msra.gmra.mrb[2].mxu1 %vm67_vm1, %v1011_v1 }
 0x103   :  { %791 = vmatprep.mubr.msk.f32.mxu1 %vm930_vm3, %v929_v8  ;;  %813 = vmatpush3.bf16.msra.mxu1 %v812_v52 }
 0x108   :  { %v96_v23 = vpop.permute.xlu1 %95 }
 0x109   :  { %v104_v24 = vmul.f32 %v729_v2, %v96_v23 }
 0x10b   :  { %106 = vrot.lane.b32.xlu1 %v104_v24, %s934_s2 }
 0x17d   :  { %v107_v38 = vpop.permute.xlu1 %106 }
 0x1d1   :  { %v178_v39 = vpop.f32.mrb[0].mxu1 }
 0x1d2   :  { %v179_v40 = vadd.f32 %v178_v39, %v107_v38  ;;  %v762_v41 = vpop.f32.mrb[1].mxu1 }
 0x1d4   :  { %272 = vrot.lane.b32.xlu1 %v179_v40, %s936_s22 }
 0x1d5   :  { %v253_v43 = vpop.f32.mrb[2].mxu1 }
 0x1d6   :  { %v265_v44 = vadd.f32 %v263_v42, %v253_v43  ;;  %v767_v45 = vpop.f32.mrb[3].mxu1  ;;  %v453_v59 = vmul.f32 0.1, %v253_v43 }
 0x1d8   :  { %v266_v46 = vmax.f32 %v265_v44, 0.0 }
 0x1da   :  { %268 = vrot.lane.b32.xlu0 %v266_v46, %s937_s23 }
 0x1de   :  { %359 = vrot.lane.b32.xlu0 %v733_v13, %s934_s2  ;;  %s939_s2 = smov 4  }
 0x246   :  { %v1080_v47 = vpop.permute.xlu1 %272 }
 0x24c   :  { %v269_v48 = vpop.permute.xlu0 %268 }
 0x24d   :  { %v276_v49 = vsel %vm275_vm6, %v269_v48, %v1080_v47 }
 0x24e   :  { %785 = vmatmul.mubr.msk.f32.vlgmr.msra.gmra.mrb[0].mxu0 %vm285_vm7, %v276_v49 }
 0x250   :  { %v360_v53 = vpop.permute.xlu0 %359 }
 0x321   :  { %v355_v54 = vpop.f32.mrb[0].mxu0 }
 0x322   :  { %v362_v55 = vadd.f32 %v360_v53, %v355_v54  ;;  %v786_v56 = vpop.f32.mrb[1].mxu0 }
 0x324   :  { %v363_v57 = vmul.f32 %v362_v55, %v253_v43 }
 0x326   :  { %v364_v58 = vmax.f32 %v363_v57, 0.0 }
 0x328   :  { %366 = vrot.lane.b32.xlu1 %v364_v58, %s928_s1 }
 0x32c   :  { %468 = vrot.lane.b32.xlu1 %v453_v59, %s925_s17 }
 0x39a   :  { %v367_v60 = vpop.permute.xlu1 %366 }
 0x39b   :  { %v369_v61 = vsel %vm67_vm1, %v363_v57, %v367_v60 }
 0x39c   :  { %792 = vmatmul.mubr.msk.f32.vlgmr.msra.gmra.mrb[4].mxu1 %vm86_vm4, %v369_v61 }
 0x39e   :  { %v469_v62 = vpop.permute.xlu1 %468 }
 0x39f   :  { %472 = vst.msk [vmem:[#allocation4] sm:$0xff] %vm471_vm8, %v469_v62 }
 0x46f   :  { %v441_v63 = vpop.f32.mrb[4].mxu1 }
 0x470   :  { %v446_v0 = vmax.f32 %v441_v63, 0.0  ;;  %v793_v2 = vpop.f32.mrb[5].mxu1  ;;  %v445_v5 = vsub.f32 0.0, %v441_v63 }
 0x472   :  { %448 = vrot.lane.b32.xlu0 %v446_v0, %s938_s6 }
 0x476   :  { %456 = vrot.lane.b32.xlu0 %v363_v57, %s928_s1 }
 0x47a   :  { %462 = vrot.lane.b32.xlu0 %v355_v54, %s928_s1 }
 0x4e4   :  { %v449_v6 = vpop.permute.xlu0 %448 }
 0x4e5   :  { %v451_v7 = vadd.f32 %v449_v6, %v445_v5 }
 0x4e7   :  { %v452_v9 = vmul.f32 0.1, %v451_v7 }
 0x4e8   :  { %v457_v10 = vpop.permute.xlu0 %456 }
 0x4e9   :  { %460 = vst.msk [vmem:[#allocation5] sm:$0xff] %vm459_vm9, %v457_v10  ;;  %474 = vrot.lane.b32.xlu1 %v452_v9, %s939_s2 }
 0x4ec   :  { %v463_v11 = vpop.permute.xlu0 %462 }
 0x4ed   :  { %466 = vst.msk [vmem:[#allocation5] sm:$0xff] %vm465_vm10, %v463_v11 }
 0x55b   :  { %v475_v12 = vpop.permute.xlu1 %474 }
 0x55c   :  { %478 = vst.msk [vmem:[#allocation4] sm:$0xff] %vm477_vm11, %v475_v12 }
 0x55d   :  { %480 = vst.msk [vmem:[#allocation4] sm:$0xff] %vm479_vm12, %v1011_v1 }
 0x55e LB: > { %v493_v13 = vlaneseq  ;;  %vm501_vm13 = vcmask 1043456   ;;  %v940_v14 = vmov 0.0   ;;  %vm941_vm14 = vmmov 0   ;;  %s942_s1 = smov 64   ;;  %s490_s4 = scalar_lea.vmem [#allocation4], %s923_s7  ;;  %s923_s7 = sphi %s1106_s7, %s488_s7   ;;  %v919_v3 = vphi %v1015_v3, %v1173_v3  }
 0x55f   : > { %794 = vmatprep.subr.mxu0 %v940_v14  ;;  %796 = vmatprep.mubr.msk.f32.mxu0 %vm941_vm14, %v940_v14  ;;  %s943_s27 = smov 124   ;;  %v944_v19 = vmov 1966171168   ;;  %v576_v30 = vsub.f32 1.0, %v919_v3  ;;  %s945_s28 = smov 120   ;;  %vm658_vm15 = vcmask 122976  }
 0x560   : > { %v494_v15 = vshrl.u32 %v493_v13, 7  ;;  %795 = vmatpush3.msk.msra.mxu0 %vm501_vm13, %v1099_v4  ;;  %v594_v20 = vunpack.c.l.s4 %v944_v19  ;;  %v586_v33 = vadd.f32 0.05, %v919_v3  ;;  %s946_s29 = smov 76   ;;  %s488_s7 = sadd.s32 1, %s923_s7  }
 0x561   : > { %p485_p0 = scmp.ge.s32.totalorder %s488_s7, 8  }
 0x562   : > { %v495_v1 = vsub.s32 0, %v494_v15  ;;  %v595_v22 = vunpack.c.0.s8 %v594_v20  ;;  %vm674_vm0 = vcmask (%p485_p0), 261127   ;;  %s947_s30 = smov (%p485_p0), 52   ;;  %vm676_vm2 = vcmask (%p485_p0), 523527   ;;  %s948_s11 = smov (%p485_p0), [#allocation7]  }
 0x563   :  { %675 = vst.msk [vmem:[#allocation2 - $0x7] sm:$0x80] (%p485_p0), %vm674_vm0, %v1039_v21  ;;  %vm678_vm3 = vcmask (%p485_p0), 549376   ;;  %683 = vst.msk [vmem:[#allocation7 - $0x7] sm:$0x80] (%p485_p0), %vm674_vm0, %v1039_v21  ;;  %s707_s12 = sshll.u32 (%p485_p0), %s948_s11, 4  ;;  %s708_s12 = int_to_ptr.vmem [resolvable:$true] %s707_s12 }
 0x564   : > { %v496_v16 = vrot.slane %v919_v3, %v495_v1  ;;  %v491_v17 = vld [vmem:[%s490_s4] sm:$0x1]  ;;  %v598_v27 = vsub.s32 %v595_v22, %v494_v15  ;;  %v581_v32 = vrot.slane %v576_v30, %v495_v1  ;;  %677 = vst.msk [vmem:[#allocation2 - $0x7] sm:$0x80] (%p485_p0), %vm676_vm2, %v1080_v47  ;;  %684 = vst.msk [vmem:[#allocation7 - $0x7] sm:$0x80] (%p485_p0), %vm676_vm2, %v1080_v47  ;;  %p866_p2 = scmp.lt.s32.totalorder (%p485_p0), %s708_s12, %s708_s12 }
 0x565   :  { %s949_s13 = smov (%p485_p0), [#allocation5]   ;;  %s861_s15 = scalar_lea.vmem (%p485_p0), %s708_s12, 16 }
 0x566   : > { %497 = vrot.lane.b32.xlu0 %v496_v16, %s942_s1  ;;  %s697_s14 = sshll.u32 (%p485_p0), %s949_s13, 4  ;;  %p862_p1 = scmp.ne.s32.totalorder (%p485_p0), %s708_s12, %s861_s15  ;;  %s698_s14 = int_to_ptr.vmem [resolvable:$true] %s697_s14 }
 0x567   :  { %s865_s16 = scalar_lea.vmem (%p485_p0), %s708_s12, 32 }
 0x568   :  { %p867_p3 = scmp.lt.s32.totalorder (%p485_p0), %s865_s16, %s861_s15 }
 0x56a   : > { %588 = vrot.lane.b32.xlu0 %v491_v17, %s943_s27  ;;  %p868_p4 = por (%p485_p0), %p867_p3, %p866_p2 }
 0x56c   :  { %p869_p5 = pnand (%p485_p0), %p868_p4, %p862_p1 }
 0x5d8   : > { %v498_v18 = vpop.permute.xlu0 %497 }
 0x5d9   : > { %797 = vmatmul.mubr.msk.f32.vlgmr.msra.gmra.mrb[0].mxu0 %vm471_vm8, %v498_v18 }
 0x5dc   : > { %v589_v24 = vpop.permute.xlu0 %588 }
 0x6ac   : > { %v571_v23 = vpop.f32.mrb[0].mxu0 }
 0x6ad   : > { %v575_v25 = vmul.f32 0.1, %v571_v23  ;;  %v798_v26 = vpop.f32.mrb[1].mxu0 }
 0x6af   : > { %v591_v28 = vadd.f32 %v589_v24, %v575_v25 }
 0x6b1   : > { %v599_v29 = vrot.slane %v591_v28, %v598_v27 }
 0x6b3   : > { %v606_v31 = vrot.slane %v599_v29, %v598_v27 }
 0x6b5   : > { %607 = vrot.lane.b32.xlu1 %v606_v31, %s942_s1 }
 0x6b9   : > { %582 = vrot.lane.b32.xlu1 %v581_v32, %s942_s1 }
 0x6bd   : > { %620 = vrot.lane.b32.xlu1 %v491_v17, %s945_s28 }
 0x727   : > { %v608_v34 = vpop.permute.xlu1 %607 }
 0x728   : > { %v610_v35 = vmul.f32 %v608_v34, %v586_v33 }
 0x72a   : > { %v615_v36 = vrot.slane %v610_v35, %v495_v1 }
 0x72b   : > { %v583_v37 = vpop.permute.xlu1 %582 }
 0x72c   : > { %616 = vrot.lane.b32.xlu0 %v615_v36, %s942_s1  ;;  %v585_v38 = vmul.f32 %v583_v37, %v491_v17 }
 0x72f   : > { %v621_v40 = vpop.permute.xlu1 %620 }
 0x79e   : > { %v617_v39 = vpop.permute.xlu0 %616 }
 0x79f   : > { %v619_v41 = vsub.f32 %v585_v38, %v617_v39 }
 0x7a1   : > { %v623_v42 = vadd.f32 %v621_v40, %v619_v41 }
 0x7a3   : > { %v624_v43 = vmul.f32 0.01, %v623_v42 }
 0x7a5   : > { %v632_v44 = vrot.slane %v624_v43, %v598_v27 }
 0x7a7   : > { %v639_v45 = vrot.slane %v632_v44, %v598_v27 }
 0x7a9   : > { %640 = vrot.lane.b32.xlu0 %v639_v45, %s942_s1 }
 0x81b   : > { %v641_v46 = vpop.permute.xlu0 %640 }
 0x81c   : > { %v643_v48 = vadd.f32 %v919_v3, %v641_v46 }
 0x81e   : > { %v738_v49 = vmul.f32 -1.442695, %v643_v48 }
 0x820   : > { %857 = vpow2.f32 %v738_v49 }
 0x82a   : > { %v858_v50 = vpop.eup %857 }
 0x82b   : > { %v647_v51 = vadd.f32 1.0, %v858_v50 }
 0x82d   : > { %859 = vrcp.f32 %v647_v51 }
 0x837   : > { %v860_v52 = vpop.eup %859  }
 0x838   : > { %v654_v53 = vrot.slane %v860_v52, %v495_v1  ;;  %v1173_v3 = vmov %v860_v52  ;;  %679 = vst.msk [vmem:[#allocation2] sm:$0x1] (%p485_p0), %vm678_vm3, %v860_v52 }
 0x83a   : > { %655 = vrot.lane.b32.xlu1 %v654_v53, %s946_s29 }
 0x8a7   :  { %487 = sbr.rel (!%p485_p0) target bundleno = 1374 (0x55e), region = 80 }
 0x8ac   : > { %v656_v54 = vpop.permute.xlu1 %655 }
 0x8ad   : > { %659 = vst.msk [vmem:[%s490_s4] sm:$0x1] %vm658_vm15, %v656_v54 }
 0x8b4   :  { %v660_v3 = vld [vmem:[#allocation4] sm:$0xff] }
 0x8b5   :  { %v685_v55 = vld [vmem:[#allocation4 + $0x7] sm:$0x1]  ;;  %662 = vrot.lane.b32.xlu0 %v660_v3, %s937_s23  ;;  %vm666_vm1 = vcmp.gt.f32.partialorder %v660_v3, 0.5 }
 0x8b6   :  { %687 = vrot.lane.b32.xlu1 %v685_v55, %s947_s30  ;;  %v739_v56 = vsel %vm666_vm1, 1.0, %v929_v8 }
 0x8b9   :  { %670 = vrot.lane.b32.xlu0 %v739_v56, %s925_s17 }
 0x927   :  { %v663_v57 = vpop.permute.xlu0 %662 }
 0x928   :  { %v688_v58 = vpop.permute.xlu1 %687  ;;  %665 = vst.msk [vmem:[#allocation5] sm:$0xff] %vm471_vm8, %v663_v57 }
 0x929   :  { %690 = vst.msk [vmem:[#allocation7] sm:$0x1] %vm678_vm3, %v688_v58 }
 0x92a   :  { %872 = shalt.err (!%p869_p5)
}
 0x92b   :  { %s873_s18 = scalar_lea.hbm %s1172_s10, 16 }
 0x92c   :  { %p874_p6 = scmp.ne.s32.totalorder %s1172_s10, %s873_s18  ;;  %p877_p7 = scmp.lt.u32.totalorder %s873_s18, %s1172_s10 }
 0x92e   :  { %p879_p8 = pnand %p877_p7, %p874_p6 }
 0x930   :  { %882 = shalt.err (!%p879_p8)
}
 0x931   :  { %710 = dma.vmem_to_hbm [thread:$0]  %s708_s12, 16, %s1172_s10, [#allocation8]   ;;  %v671_v8 = vpop.permute.xlu0 %670 }
 0x932   :  { %673 = vst.msk [vmem:[#allocation5] sm:$0xff] %vm477_vm11, %v671_v8  ;;  %s883_s24 = scalar_lea.vmem %s698_s14, 128  ;;  %p888_p10 = scmp.lt.s32.totalorder %s698_s14, %s698_s14 }
 0x933   :  { %p884_p9 = scmp.ne.s32.totalorder %s698_s14, %s883_s24  ;;  %p889_p11 = scmp.lt.s32.totalorder %s883_s24, %s883_s24 }
 0x935   :  { %p890_p12 = por %p889_p11, %p888_p10 }
 0x937   :  { %p891_p13 = pnand %p890_p12, %p884_p9 }
 0x939   :  { %894 = shalt.err (!%p891_p13)
}
 0x93a   :  { %s895_s6 = scalar_lea.hbm %s1171_s9, 128 }
 0x93b   :  { %p896_p0 = scmp.ne.s32.totalorder %s1171_s9, %s895_s6  ;;  %p899_p1 = scmp.lt.u32.totalorder %s895_s6, %s1171_s9 }
 0x93d   :  { %p901_p2 = pnand %p899_p1, %p896_p0 }
 0x93f   :  { %904 = shalt.err (!%p901_p2)
}
 0x940   :  { %700 = dma.vmem_to_hbm [thread:$0]  %s698_s14, 128, %s1171_s9, [#allocation6]  }
 0x941   :  { %913 = dma.done.wait [#allocation6], 128  }
 0x942   :  { %914 = vsyncadd [#allocation6], 4294967168 }
 0x943   :  { %915 = dma.done.wait [#allocation8], 16  }
 0x944   :  { %916 = vsyncadd [#allocation8], 4294967280 }
 0x945   :  { %717 = vsyncpa [#allocation6], 1 }
 0x946   :  { %718 = vsyncpa [#allocation8], 1 }

</bundles_post_ra>
